<compile_context>
chip_gen: v7x
topology: tpu7x:2x2x1
jax: 0.10.0
libtpu: 0.0.40
codegen_flags: <defaults>
</compile_context>

<pallas_src>
import functools

import jax
import jax.numpy as jnp
from jax.experimental import pallas as pl
from jax.experimental.pallas import tpu as pltpu

LANE = 128
SUBLANE = 8
MXU_K_THRESHOLD = 32  # use the MXU only when the contraction dim exceeds this


# ----------------------------------------------------------------------------
# Layer-size tables copied from the PyTorch module's __init__.
# ----------------------------------------------------------------------------
def layer_sizes(depth: str, n_feature: int, n_output: int):
    if depth == "shallow":
        return [n_feature, 190, n_output]
    if depth == "middle":
        return [n_feature, 18, 15, 4, n_output]
    return [n_feature, 5, 10, 10, 10, 10, 10, 5, n_output]


def _round_up(x: int, m: int) -> int:
    return ((x + m - 1) // m) * m


# ----------------------------------------------------------------------------
# Parameter packing: one slab, one DMA.
# ----------------------------------------------------------------------------
def pack_params(weights, biases):
    """Pack all layers into ONE f32 slab.

    weights[i] is torch-layout (out_i, in_i); biases[i] is (out_i,).
    Layer i occupies rows [row_i, row_i + out_i): columns [0, in_i) = weight,
    column in_i = bias.  Row offsets are 8-aligned so in-kernel static slices
    start on sublane-tile boundaries.
    Returns (slab, meta) with meta = ((row_i, out_i, in_i), ...).
    """
    max_cols = max(w.shape[1] + 1 for w in weights)
    n_cols = _round_up(max_cols, LANE)
    blocks, meta, row = [], [], 0
    for w, b in zip(weights, biases):
        out_i, in_i = w.shape
        pad_rows = _round_up(out_i, SUBLANE)
        blk = jnp.zeros((pad_rows, n_cols), jnp.float32)
        blk = blk.at[:out_i, :in_i].set(w.astype(jnp.float32))
        blk = blk.at[:out_i, in_i].set(b.astype(jnp.float32))
        blocks.append(blk)
        meta.append((row, out_i, in_i))
        row += pad_rows
    return jnp.concatenate(blocks, axis=0), tuple(meta)


# ----------------------------------------------------------------------------
# Fused MLP kernel: activations (features, NB) with batch on lanes.
# ----------------------------------------------------------------------------
def _mlp_kernel(meta, x_ref, params_ref, out_ref):
    nb = x_ref.shape[1]          # padded batch (lane dim, multiple of 128)
    num_layers = len(meta)
    h = x_ref[...]               # (n_feature, nb)
    for i, (row, out_i, in_i) in enumerate(meta):
        w = params_ref[row:row + out_i, 0:in_i]          # (out_i, in_i)
        b = params_ref[row:row + out_i, in_i:in_i + 1]   # (out_i, 1)
        if in_i > MXU_K_THRESHOLD:
            # Wide contraction (shallow's 190-wide predict layer): MXU, f32 acc.
            y = jnp.dot(w, h, preferred_element_type=jnp.float32) + b
        else:
            # Tiny contraction: statically unrolled VPU multiply-accumulate.
            y = jnp.broadcast_to(b, (out_i, nb))
            for k in range(in_i):
                y = y + w[:, k:k + 1] * h[k:k + 1, :]
        if i < num_layers - 1:    # ReLU on hidden layers only (not on predict)
            y = jnp.maximum(y, 0.0)
        h = y
    out_ref[...] = h              # (n_output, nb): lane-dense store


def mlp_forward(x, weights, biases):
    """x: (N, n_feature) f32.  weights[i]: torch layout (out_i, in_i).  biases[i]: (out_i,)."""
    n, n_feature = x.shape
    n_output = weights[-1].shape[0]
    nb = _round_up(max(n, LANE), LANE)

    # Flip: batch on lanes, features on sublanes; zero-pad batch to 128.
    xt = jnp.zeros((n_feature, nb), jnp.float32).at[:, :n].set(
        x.astype(jnp.float32).T)

    slab, meta = pack_params(weights, biases)
    kernel = functools.partial(_mlp_kernel, meta)
    vmem = pl.BlockSpec(memory_space=pltpu.MemorySpace.VMEM)

    out_t = pl.pallas_call(
        kernel,
        out_shape=jax.ShapeDtypeStruct((n_output, nb), jnp.float32),
        in_specs=[vmem, vmem],
        out_specs=vmem,
    )(xt, slab)

    return out_t[:, :n].T        # back to (N, n_output)


# ----------------------------------------------------------------------------
# Deterministic synthetic params (torch nn.Linear default init scale/layout).
# ----------------------------------------------------------------------------
def init_params(depth, n_feature, n_output, key):
    dims = layer_sizes(depth, n_feature, n_output)
    weights, biases = [], []
    for i in range(len(dims) - 1):
        key, kw, kb = jax.random.split(key, 3)
        bound = 1.0 / (dims[i] ** 0.5)
        w = jax.random.uniform(kw, (dims[i + 1], dims[i]),   # (out, in) torch layout
                               minval=-bound, maxval=bound, dtype=jnp.float32)
        b = jax.random.uniform(kb, (dims[i + 1],),
                               minval=-bound, maxval=bound, dtype=jnp.float32)
        weights.append(w)
        biases.append(b)
    return weights, biases


def mlp_reference(x, weights, biases):
    h = x
    for i, (w, b) in enumerate(zip(weights, biases)):
        h = h @ w.T + b
        if i < len(weights) - 1:
            h = jnp.maximum(h, 0.0)
    return h


if __name__ == "__main__":
    key = jax.random.PRNGKey(0)

    # Mirrors the original script: torch.unsqueeze(torch.linspace(-1, 1, 100), 1)
    x = jnp.linspace(-1.0, 1.0, 100, dtype=jnp.float32).reshape(100, 1)

    n_feature, n_output = 1, 1
    ok = True
    for depth in ("shallow", "middle", "deep"):
        key, sub = jax.random.split(key)
        weights, biases = init_params(depth, n_feature, n_output, sub)
        out = mlp_forward(x, weights, biases)
        jax.block_until_ready(out)
        ref = mlp_reference(x, weights, biases)
        ok = ok and bool(jnp.allclose(out, ref, atol=1e-5, rtol=1e-5))
        assert out.shape == (100, n_output)

    if ok:
        print("KERNEL_OK")
</pallas_src>

<mosaic_0001>
module attributes {stable_mosaic.version = 11 : i64} {
  func.func @_mlp_kernel(%arg0: memref<1x128xf32, #tpu.memory_space<vmem>>, %arg1: memref<200x256xf32, #tpu.memory_space<vmem>>, %arg2: memref<1x128xf32, #tpu.memory_space<vmem>>) attributes {dimension_semantics = [], scalar_prefetch = 0 : i64, scratch_operands = 0 : i64, tpu.core_type = #tpu.core_type<tc>} {
    %c0 = arith.constant 0 : index
    %c0_0 = arith.constant 0 : index
    %0 = vector.load %arg0[%c0, %c0_0] : memref<1x128xf32, #tpu.memory_space<vmem>>, vector<1x128xf32>
    %c0_1 = arith.constant 0 : index
    %c0_2 = arith.constant 0 : index
    %1 = vector.load %arg1[%c0_1, %c0_2] : memref<200x256xf32, #tpu.memory_space<vmem>>, vector<190x1xf32>
    %c0_3 = arith.constant 0 : index
    %c1 = arith.constant 1 : index
    %2 = vector.load %arg1[%c0_3, %c1] : memref<200x256xf32, #tpu.memory_space<vmem>>, vector<190x1xf32>
    %3 = vector.shape_cast %2 : vector<190x1xf32> to vector<190x1xf32>
    %4 = vector.broadcast %3 : vector<190x1xf32> to vector<190x128xf32>
    %5 = vector.broadcast %1 : vector<190x1xf32> to vector<190x128xf32>
    %6 = vector.broadcast %0 : vector<1x128xf32> to vector<190x128xf32>
    %7 = arith.mulf %5, %6 : vector<190x128xf32>
    %8 = arith.addf %4, %7 : vector<190x128xf32>
    %cst = arith.constant 0.000000e+00 : f32
    %9 = vector.broadcast %cst : f32 to vector<190x128xf32>
    %10 = arith.maximumf %8, %9 : vector<190x128xf32>
    %c192 = arith.constant 192 : index
    %c0_4 = arith.constant 0 : index
    %11 = vector.load %arg1[%c192, %c0_4] : memref<200x256xf32, #tpu.memory_space<vmem>>, vector<1x190xf32>
    %c192_5 = arith.constant 192 : index
    %c190 = arith.constant 190 : index
    %12 = vector.load %arg1[%c192_5, %c190] : memref<200x256xf32, #tpu.memory_space<vmem>>, vector<1x1xf32>
    %cst_6 = arith.constant dense<0.000000e+00> : vector<1x128xf32>
    %13 = tpu.matmul %11, %10, %cst_6 {dimension_numbers = #tpu.dot_dimension_numbers<[1], [0], [0], [1], [0, 0, 1, 1], [], []>} : vector<1x190xf32>, vector<190x128xf32>, vector<1x128xf32> -> vector<1x128xf32>
    %14 = vector.broadcast %12 : vector<1x1xf32> to vector<1x128xf32>
    %15 = arith.addf %13, %14 : vector<1x128xf32>
    %c0_7 = arith.constant 0 : index
    %c0_8 = arith.constant 0 : index
    %16 = vector.load %arg2[%c0_7, %c0_8] : memref<1x128xf32, #tpu.memory_space<vmem>>, vector<1x128xf32>
    tpu.vector_store %arg2[%c0_7, %c0_8], %15 {strides = array<i32>} : memref<1x128xf32, #tpu.memory_space<vmem>>, vector<1x128xf32>,
    return
  }
}

</mosaic_0001>

<bundles_post_ra>
// kernel: tpu_custom_call.1
= control target key start
LH: loop header
LB: loop body
LE: loop exit
PB: predicated region body
PF: predicated region fallthrough
CT: control target
= control target key end

     0   :  { %7 = vsyncpa [#allocation3], 0  ;;  %s763_s0 = inlined_call_operand.hbm [shape: f32[1,128], index: 0, kind: input, shape index: {}]   ;;  %s764_s1 = inlined_call_operand.hbm [shape: f32[200,256], index: 1, kind: input, shape index: {}]   ;;  %s765_s2 = inlined_call_operand.hbm [shape: f32[1,128], index: 2, kind: output, shape index: {}]  }
   0x1   :  { %8 = vsyncpa [#allocation6], 0 }
   0x2   :  { %9 = vsyncpa [#allocation4], 0  ;;  %s619_s9 = smov [#allocation2]   ;;  %s620_s11 = smov [#allocation5]  }
   0x3   :  { %s16_s10 = sshll.u32 %s619_s9, 4  ;;  %s25_s12 = sshll.u32 %s620_s11, 4  ;;  %s17_s10 = int_to_ptr.vmem [resolvable:$true] %s16_s10  ;;  %s644_s12 = int_to_ptr.vmem [resolvable:$true] %s25_s12 }
   0x4   :  { %s547_s15 = scalar_lea.hbm %s763_s0, 16 }
   0x5   :  { %p548_p0 = scmp.ne.s32.totalorder %s763_s0, %s547_s15  ;;  %p551_p1 = scmp.lt.u32.totalorder %s547_s15, %s763_s0 }
   0x7   :  { %p553_p2 = pnand %p551_p1, %p548_p0 }
   0x9   :  { %556 = shalt.err (!%p553_p2)
}
   0xa   :  { %s557_s20 = scalar_lea.vmem %s17_s10, 16  ;;  %s561_s21 = scalar_lea.vmem %s17_s10, 32 }
   0xb   :  { %p558_p3 = scmp.ne.s32.totalorder %s17_s10, %s557_s20  ;;  %p562_p4 = scmp.lt.s32.totalorder %s17_s10, %s17_s10 }
   0xc   :  { %p563_p5 = scmp.lt.s32.totalorder %s561_s21, %s557_s20 }
   0xe   :  { %p564_p6 = por %p563_p5, %p562_p4 }
  0x10   :  { %p565_p7 = pnand %p564_p6, %p558_p3 }
  0x12   :  { %568 = shalt.err (!%p565_p7)
}
  0x13   :  { %19 = dma.hbm_to_vmem [thread:$0]  %s763_s0, 16, %s17_s10, [#allocation3]  }
  0x14   :  { %s569_s26 = scalar_lea.hbm %s764_s1, 6400 }
  0x15   :  { %p570_p8 = scmp.ne.s32.totalorder %s764_s1, %s569_s26  ;;  %p573_p9 = scmp.lt.u32.totalorder %s569_s26, %s764_s1 }
  0x17   :  { %p575_p10 = pnand %p573_p9, %p570_p8 }
  0x19   :  { %578 = shalt.err (!%p575_p10)
}
  0x1a   :  { %s579_s3 = scalar_lea.vmem %s644_s12, 6400  ;;  %p584_p12 = scmp.lt.s32.totalorder %s644_s12, %s644_s12 }
  0x1b   :  { %p580_p11 = scmp.ne.s32.totalorder %s644_s12, %s579_s3  ;;  %p585_p13 = scmp.lt.s32.totalorder %s579_s3, %s579_s3 }
  0x1d   :  { %p586_p0 = por %p585_p13, %p584_p12 }
  0x1f   :  { %p587_p1 = pnand %p586_p0, %p580_p11 }
  0x21   :  { %590 = shalt.err (!%p587_p1)
}
  0x22   :  { %s621_s0 = smov 256   ;;  %s622_s4 = smov 16  }
  0x23   :  { %31 = dma.hbm_to_vmem [thread:$0]  %s764_s1, 6400, %s644_s12, [#allocation6], %s621_s0, %s621_s0, %s622_s4  }
  0x24   :  { %613 = dma.done.wait [#allocation3], 16  }
  0x25   :  { %614 = vsyncadd [#allocation3], 4294967280 }
  0x26   :  { %615 = dma.done.wait [#allocation6], 6400  }
  0x27   :  { %616 = vsyncadd [#allocation6], 4294960896  ;;  %v623_v0 = vmov 1   ;;  %v41_v1 = vld [vmem:[#allocation5 + $0x20] sm:$0xff]  ;;  %v40_v4 = vld [vmem:[#allocation5 + $0x10] sm:$0xff]  ;;  %v624_v7 = vmov 0   ;;  %v366_v31 = vlaneseq }
  0x28   :  { %521 = vset.pattern.permute.xlu0 %v623_v0  ;;  %519 = vset.pattern.permute.xlu1 %v623_v0  ;;  %v39_v2 = vld [vmem:[#allocation5] sm:$0xff]  ;;  %v42_v6 = vld [vmem:[#allocation5 + $0x30] sm:$0xff]  ;;  %v625_v13 = vmov 0.0|0.0   ;;  %vm375_vm0 = vcmask 506880   ;;  %v359_v43 = vld [vmem:[#allocation5 + $0x188] ss:$0 sm:$0xff] }
  0x29   :  { %75 = vperm.xlu0 %521, %v41_v1   ;;  %65 = vperm.xlu1 %519, %v39_v2   ;;  %v45_v3 = vld [vmem:[#allocation5 + $0x60] sm:$0xff]  ;;  %v44_v11 = vld [vmem:[#allocation5 + $0x50] sm:$0xff]  ;;  %v367_v34 = vshrl.u32 %v366_v31, 7  ;;  %v626_v44 = vmov 62   ;;  %v710_v46 = vld [vmem:[#allocation2] ss:$0 sm:$0xff] }
  0x2a   :  { %v49_v5 = vld [vmem:[#allocation5 + $0xa0] sm:$0xff]  ;;  %v46_v12 = vld [vmem:[#allocation5 + $0x70] sm:$0xff]  ;;  %472 = vmatprep.subr.bf16.mxu0 %v625_v13  ;;  %vm378_vm1 = vcmask 1045504   ;;  %vm627_vm2 = vmmov 1   ;;  %s628_s1 = smov [#allocation7]  }
  0x2b   :  { %v53_v8 = vld [vmem:[#allocation5 + $0xe0] sm:$0xff]  ;;  %v48_v14 = vld [vmem:[#allocation5 + $0x90] sm:$0xff]  ;;  %v372_v35 = vsub.s32 1, %v367_v34  ;;  %v368_v38 = vsub.s32 0, %v367_v34  ;;  %vm507_vm3 = vmpackc.low %vm378_vm1, %vm627_vm2  ;;  %s459_s7 = sshll.u32 %s628_s1, 4  ;;  %s460_s7 = int_to_ptr.vmem [resolvable:$true] %s459_s7 }
  0x2c   :  { %v57_v9 = vld [vmem:[#allocation5 + $0x120] sm:$0xff]  ;;  %v52_v16 = vld [vmem:[#allocation5 + $0xd0] sm:$0xff]  ;;  %s591_s8 = scalar_lea.vmem %s460_s7, 16  ;;  %s595_s9 = scalar_lea.vmem %s460_s7, 32 }
  0x2d   :  { %95 = vperm.xlu0 %521, %v45_v3   ;;  %70 = vperm.xlu1 %519, %v40_v4   ;;  %v43_v10 = vld [vmem:[#allocation5 + $0x40] sm:$0xff]  ;;  %v56_v17 = vld [vmem:[#allocation5 + $0x110] sm:$0xff]  ;;  %p592_p2 = scmp.ne.s32.totalorder %s460_s7, %s591_s8  ;;  %p596_p3 = scmp.lt.s32.totalorder %s460_s7, %s460_s7 }
  0x2e   :  { %v47_v15 = vld [vmem:[#allocation5 + $0x80] sm:$0xff]  ;;  %v50_v18 = vld [vmem:[#allocation5 + $0xb0] sm:$0xff]  ;;  %p597_p4 = scmp.lt.s32.totalorder %s595_s9, %s591_s8 }
  0x2f   :  { %v60_v19 = vld [vmem:[#allocation5 + $0x150] sm:$0xff]  ;;  %v51_v20 = vld [vmem:[#allocation5 + $0xc0] sm:$0xff] }
  0x30   :  { %v61_v21 = vld [vmem:[#allocation5 + $0x160] sm:$0xff]  ;;  %v54_v22 = vld [vmem:[#allocation5 + $0xf0] sm:$0xff]  ;;  %p598_p5 = por %p597_p4, %p596_p3 }
  0x31   :  { %115 = vperm.xlu0 %521, %v49_v5   ;;  %520 = vset.pattern.permute.xlu1 %v624_v7  ;;  %v55_v23 = vld [vmem:[#allocation5 + $0x100] sm:$0xff]  ;;  %v58_v24 = vld [vmem:[#allocation5 + $0x130] sm:$0xff] }
  0x32   :  { %196 = vperm.xlu1 %520, %v42_v6   ;;  %v59_v25 = vld [vmem:[#allocation5 + $0x140] sm:$0xff]  ;;  %v62_v26 = vld [vmem:[#allocation5 + $0x170] sm:$0x3f]  ;;  %p599_p6 = pnand %p598_p5, %p592_p2 }
  0x33   :  { %v358_v37 = vld [vmem:[#allocation5 + $0x180] ss:$8 sm:$0x3] }
  0x34   :  { %v373_v39 = vrot.slane %v358_v37, %v372_v35  ;;  %v706_v41 = vrot.slane %v358_v37, %v368_v38 }
  0x35   :  { %135 = vperm.xlu0 %521, %v53_v8  }
  0x36   :  { %522 = vset.pattern.permute.xlu1 %v623_v0  ;;  %471 = vmatprep.mubr.msk.f32.mxu0 %vm375_vm0, %v373_v39 }
  0x37   :  { %80 = vperm.xlu1 %522, %v42_v6  }
  0x39   :  { %155 = vperm.xlu0 %521, %v57_v9  }
  0x3b   :  { %523 = vset.pattern.permute.xlu1 %v624_v7 }
  0x3c   :  { %200 = vperm.xlu1 %523, %v43_v10  }
  0x3d   :  { %538 = vset.pattern.permute.xlu0 %v624_v7 }
  0x3e   :  { %184 = vperm.xlu0 %538, %v39_v2  }
  0x40   :  { %524 = vset.pattern.permute.xlu1 %v623_v0 }
  0x41   :  { %85 = vperm.xlu1 %524, %v43_v10  }
  0x42   :  { %188 = vperm.xlu0 %538, %v40_v4  }
  0x45   :  { %90 = vperm.xlu1 %524, %v44_v11  }
  0x46   :  { %192 = vperm.xlu0 %538, %v41_v1  }
  0x49   :  { %525 = vset.pattern.permute.xlu1 %v624_v7 }
  0x4a   :  { %204 = vperm.xlu0 %538, %v44_v11   ;;  %212 = vperm.xlu1 %525, %v46_v12  }
  0x4e   :  { %208 = vperm.xlu0 %538, %v45_v3   ;;  %526 = vset.pattern.permute.xlu1 %v623_v0 }
  0x4f   :  { %100 = vperm.xlu1 %526, %v46_v12  }
  0x52   :  { %220 = vperm.xlu0 %538, %v48_v14  }
  0x53   :  { %527 = vset.pattern.permute.xlu1 %v624_v7 }
  0x54   :  { %216 = vperm.xlu1 %527, %v47_v15  }
  0x56   :  { %224 = vperm.xlu0 %538, %v49_v5  }
  0x58   :  { %528 = vset.pattern.permute.xlu1 %v623_v0 }
  0x59   :  { %105 = vperm.xlu1 %528, %v47_v15  }
  0x5a   :  { %236 = vperm.xlu0 %538, %v52_v16  }
  0x5d   :  { %110 = vperm.xlu1 %528, %v48_v14  }
  0x5e   :  { %240 = vperm.xlu0 %538, %v53_v8  }
  0x61   :  { %529 = vset.pattern.permute.xlu1 %v624_v7 }
  0x62   :  { %252 = vperm.xlu0 %538, %v56_v17   ;;  %228 = vperm.xlu1 %529, %v50_v18  }
  0x66   :  { %256 = vperm.xlu0 %538, %v57_v9   ;;  %530 = vset.pattern.permute.xlu1 %v623_v0 }
  0x67   :  { %120 = vperm.xlu1 %530, %v50_v18  }
  0x6a   :  { %268 = vperm.xlu0 %538, %v60_v19  }
  0x6b   :  { %531 = vset.pattern.permute.xlu1 %v624_v7 }
  0x6c   :  { %232 = vperm.xlu1 %531, %v51_v20  }
  0x6e   :  { %272 = vperm.xlu0 %538, %v61_v21  }
  0x70   :  { %532 = vset.pattern.permute.xlu1 %v623_v0 }
  0x71   :  { %125 = vperm.xlu1 %532, %v51_v20  }
  0x72   :  { %543 = vset.pattern.permute.xlu0 %v623_v0 }
  0x73   :  { %175 = vperm.xlu0 %543, %v61_v21  }
  0x75   :  { %130 = vperm.xlu1 %532, %v52_v16  }
  0x77   :  { %546 = vset.pattern.permute.xlu0 %v626_v44 }
  0x79   :  { %533 = vset.pattern.permute.xlu1 %v624_v7 }
  0x7a   :  { %244 = vperm.xlu1 %533, %v54_v22  }
  0x7e   :  { %534 = vset.pattern.permute.xlu1 %v623_v0 }
  0x7f   :  { %140 = vperm.xlu1 %534, %v54_v22  }
  0x83   :  { %535 = vset.pattern.permute.xlu1 %v624_v7 }
  0x84   :  { %248 = vperm.xlu1 %535, %v55_v23  }
  0x88   :  { %536 = vset.pattern.permute.xlu1 %v623_v0 }
  0x89   :  { %145 = vperm.xlu1 %536, %v55_v23  }
  0x8d   :  { %150 = vperm.xlu1 %536, %v56_v17  }
  0x91   :  { %537 = vset.pattern.permute.xlu1 %v624_v7 }
  0x92   :  { %260 = vperm.xlu1 %537, %v58_v24  }
  0x96   :  { %539 = vset.pattern.permute.xlu1 %v623_v0 }
  0x97   :  { %160 = vperm.xlu1 %539, %v58_v24  }
  0x9b   :  { %540 = vset.pattern.permute.xlu1 %v624_v7 }
  0x9c   :  { %264 = vperm.xlu1 %540, %v59_v25  }
  0xa0   :  { %541 = vset.pattern.permute.xlu1 %v623_v0 }
  0xa1   :  { %165 = vperm.xlu1 %541, %v59_v25  }
  0xa5   :  { %170 = vperm.xlu1 %541, %v60_v19  }
  0xa8   :  { %v66_v27 = vpop.permute.xlu1 %65  ;;  %v76_v28 = vpop.permute.xlu0 %75 }
  0xa9   :  { %542 = vset.pattern.permute.xlu1 %v624_v7 }
  0xaa   :  { %276 = vperm.xlu1 %542, %v62_v26  }
  0xac   :  { %v71_v29 = vpop.permute.xlu1 %70  ;;  %v96_v30 = vpop.permute.xlu0 %95 }
  0xae   :  { %544 = vset.pattern.permute.xlu1 %v623_v0 }
  0xaf   :  { %180 = vperm.xlu1 %544, %v62_v26  }
  0xb0   :  { %v702_v32 = vpop.permute.xlu0 %115 }
  0xb1   :  { %v197_v33 = vpop.permute.xlu1 %196 }
  0xb2   :  { %v288_v53 = vmul.f32 %v710_v46, %v197_v33 }
  0xb3   :  { %545 = vset.pattern.permute.xlu1 %v626_v44 }
  0xb4   :  { %v704_v36 = vpop.permute.xlu0 %135  ;;  %362 = vperm.xlu1 %545, %v359_v43  }
  0xb6   :  { %v81_v40 = vpop.permute.xlu1 %80 }
  0xb7   :  { %v312_v57 = vadd.f32 %v288_v53, %v81_v40 }
  0xb8   :  { %v708_v42 = vpop.permute.xlu0 %155 }
  0xb9   :  { %v336_v2 = vmax.f32 %v312_v57, 0.0 }
  0xbb   :  { %v201_v45 = vpop.permute.xlu1 %200 }
  0xbc   :  { %v289_v61 = vmul.f32 %v710_v46, %v201_v45 }
  0xbd   :  { %v185_v47 = vpop.permute.xlu0 %184 }
  0xbe   :  { %v285_v48 = vmul.f32 %v710_v46, %v185_v47 }
  0xc0   :  { %v86_v49 = vpop.permute.xlu1 %85  ;;  %v309_v51 = vadd.f32 %v285_v48, %v66_v27 }
  0xc1   :  { %v189_v50 = vpop.permute.xlu0 %188  ;;  %v313_v3 = vadd.f32 %v289_v61, %v86_v49 }
  0xc2   :  { %v286_v52 = vmul.f32 %v710_v46, %v189_v50  ;;  %v333_v58 = vmax.f32 %v309_v51, 0.0 }
  0xc3   :  { %v337_v10 = vmax.f32 %v313_v3, 0.0 }
  0xc4   :  { %v310_v54 = vadd.f32 %v286_v52, %v71_v29  ;;  %v91_v55 = vpop.permute.xlu1 %90 }
  0xc5   :  { %v193_v56 = vpop.permute.xlu0 %192 }
  0xc6   :  { %v334_v59 = vmax.f32 %v310_v54, 0.0  ;;  %v287_v60 = vmul.f32 %v710_v46, %v193_v56 }
  0xc8   :  { %v311_v62 = vadd.f32 %v287_v60, %v76_v28  ;;  %v473_v63 = vpack.c.bf16 %v334_v59, %v333_v58 }
  0xc9   :  { %v205_v0 = vpop.permute.xlu0 %204  ;;  %v213_v1 = vpop.permute.xlu1 %212 }
  0xca   :  { %v335_v4 = vmax.f32 %v311_v62, 0.0  ;;  %v290_v5 = vmul.f32 %v710_v46, %v205_v0  ;;  %474 = vmatpush1.bf16.msra.mxu0 %v473_v63  ;;  %v292_v8 = vmul.f32 %v710_v46, %v213_v1 }
  0xcb   :  { %475 = vmatprep.subr.bf16.mxu0 %v625_v13 }
  0xcc   :  { %v314_v6 = vadd.f32 %v290_v5, %v91_v55  ;;  %v476_v7 = vpack.c.bf16 %v336_v2, %v335_v4 }
  0xcd   :  { %v209_v9 = vpop.permute.xlu0 %208 }
  0xce   :  { %v338_v11 = vmax.f32 %v314_v6, 0.0  ;;  %v291_v12 = vmul.f32 %v710_v46, %v209_v9  ;;  %v101_v14 = vpop.permute.xlu1 %100  ;;  %477 = vmatpush1.bf16.msra.mxu0 %v476_v7 }
  0xcf   :  { %v316_v15 = vadd.f32 %v292_v8, %v101_v14  ;;  %478 = vmatprep.subr.bf16.mxu0 %v625_v13 }
  0xd0   :  { %v315_v16 = vadd.f32 %v291_v12, %v96_v30  ;;  %v479_v17 = vpack.c.bf16 %v338_v11, %v337_v10 }
  0xd1   :  { %v340_v18 = vmax.f32 %v316_v15, 0.0  ;;  %v221_v22 = vpop.permute.xlu0 %220 }
  0xd2   :  { %v339_v19 = vmax.f32 %v315_v16, 0.0  ;;  %480 = vmatpush1.bf16.msra.mxu0 %v479_v17  ;;  %v294_v24 = vmul.f32 %v710_v46, %v221_v22 }
  0xd3   :  { %v217_v20 = vpop.permute.xlu1 %216  ;;  %481 = vmatprep.subr.bf16.mxu0 %v625_v13 }
  0xd4   :  { %v482_v21 = vpack.c.bf16 %v340_v18, %v339_v19  ;;  %v293_v25 = vmul.f32 %v710_v46, %v217_v20 }
  0xd5   :  { %v225_v31 = vpop.permute.xlu0 %224 }
  0xd6   :  { %483 = vmatpush1.bf16.msra.mxu0 %v482_v21  ;;  %v295_v33 = vmul.f32 %v710_v46, %v225_v31 }
  0xd7   :  { %484 = vmatprep.subr.bf16.mxu0 %v625_v13 }
  0xd8   :  { %v106_v23 = vpop.permute.xlu1 %105  ;;  %v319_v37 = vadd.f32 %v295_v33, %v702_v32 }
  0xd9   :  { %v317_v26 = vadd.f32 %v293_v25, %v106_v23  ;;  %v237_v48 = vpop.permute.xlu0 %236 }
  0xda   :  { %v343_v43 = vmax.f32 %v319_v37, 0.0  ;;  %v298_v50 = vmul.f32 %v710_v46, %v237_v48 }
  0xdb   :  { %v341_v29 = vmax.f32 %v317_v26, 0.0 }
  0xdc   :  { %v111_v27 = vpop.permute.xlu1 %110 }
  0xdd   :  { %v318_v28 = vadd.f32 %v294_v24, %v111_v27  ;;  %v241_v56 = vpop.permute.xlu0 %240 }
  0xde   :  { %v299_v57 = vmul.f32 %v710_v46, %v241_v56 }
  0xdf   :  { %v342_v30 = vmax.f32 %v318_v28, 0.0 }
  0xe0   :  { %v323_v60 = vadd.f32 %v299_v57, %v704_v36 }
  0xe1   :  { %v485_v34 = vpack.c.bf16 %v342_v30, %v341_v29  ;;  %v229_v35 = vpop.permute.xlu1 %228  ;;  %v253_v4 = vpop.permute.xlu0 %252 }
  0xe2   :  { %v296_v38 = vmul.f32 %v710_v46, %v229_v35  ;;  %v347_v0 = vmax.f32 %v323_v60, 0.0  ;;  %v302_v7 = vmul.f32 %v710_v46, %v253_v4 }
  0xe3   :  { %486 = vmatpush1.bf16.msra.mxu0 %v485_v34 }
  0xe4   :  { %487 = vmatprep.subr.bf16.mxu0 %v625_v13 }
  0xe5   :  { %v257_v10 = vpop.permute.xlu0 %256 }
  0xe6   :  { %v121_v39 = vpop.permute.xlu1 %120  ;;  %v303_v14 = vmul.f32 %v710_v46, %v257_v10 }
  0xe7   :  { %v320_v40 = vadd.f32 %v296_v38, %v121_v39 }
  0xe8   :  { %v327_v17 = vadd.f32 %v303_v14, %v708_v42 }
  0xe9   :  { %v344_v44 = vmax.f32 %v320_v40, 0.0  ;;  %v269_v25 = vpop.permute.xlu0 %268 }
  0xea   :  { %v351_v21 = vmax.f32 %v327_v17, 0.0  ;;  %v306_v28 = vmul.f32 %v710_v46, %v269_v25 }
  0xeb   :  { %v488_v45 = vpack.c.bf16 %v344_v44, %v343_v43  ;;  %v233_v47 = vpop.permute.xlu1 %232 }
  0xec   :  { %v297_v51 = vmul.f32 %v710_v46, %v233_v47 }
  0xed   :  { %489 = vmatpush1.bf16.msra.mxu0 %v488_v45  ;;  %v273_v30 = vpop.permute.xlu0 %272 }
  0xee   :  { %490 = vmatprep.subr.bf16.mxu0 %v625_v13  ;;  %v307_v35 = vmul.f32 %v710_v46, %v273_v30 }
  0xf0   :  { %v126_v49 = vpop.permute.xlu1 %125 }
  0xf1   :  { %v321_v52 = vadd.f32 %v297_v51, %v126_v49 }
  0xf2   :  { %v176_v39 = vpop.permute.xlu0 %175 }
  0xf3   :  { %v345_v54 = vmax.f32 %v321_v52, 0.0  ;;  %v331_v40 = vadd.f32 %v307_v35, %v176_v39 }
  0xf4   :  { %v131_v53 = vpop.permute.xlu1 %130 }
  0xf5   :  { %v322_v32 = vadd.f32 %v298_v50, %v131_v53  ;;  %v355_v47 = vmax.f32 %v331_v40, 0.0 }
  0xf7   :  { %v346_v55 = vmax.f32 %v322_v32, 0.0 }
  0xf9   :  { %v491_v58 = vpack.c.bf16 %v346_v55, %v345_v54  ;;  %v245_v59 = vpop.permute.xlu1 %244 }
  0xfa   :  { %v300_v61 = vmul.f32 %v710_v46, %v245_v59 }
  0xfb   :  { %492 = vmatpush1.bf16.msra.mxu0 %v491_v58 }
  0xfc   :  { %493 = vmatprep.subr.bf16.mxu0 %v625_v13 }
  0xfe   :  { %v141_v62 = vpop.permute.xlu1 %140 }
  0xff   :  { %v324_v63 = vadd.f32 %v300_v61, %v141_v62 }
 0x101   :  { %v348_v1 = vmax.f32 %v324_v63, 0.0 }
 0x103   :  { %v494_v2 = vpack.c.bf16 %v348_v1, %v347_v0  ;;  %v249_v3 = vpop.permute.xlu1 %248 }
 0x104   :  { %v301_v6 = vmul.f32 %v710_v46, %v249_v3 }
 0x105   :  { %495 = vmatpush1.bf16.msra.mxu0 %v494_v2 }
 0x106   :  { %496 = vmatprep.subr.bf16.mxu0 %v625_v13 }
 0x108   :  { %v146_v5 = vpop.permute.xlu1 %145 }
 0x109   :  { %v325_v8 = vadd.f32 %v301_v6, %v146_v5 }
 0x10b   :  { %v349_v11 = vmax.f32 %v325_v8, 0.0 }
 0x10c   :  { %v151_v9 = vpop.permute.xlu1 %150 }
 0x10d   :  { %v326_v36 = vadd.f32 %v302_v7, %v151_v9 }
 0x10f   :  { %v350_v12 = vmax.f32 %v326_v36, 0.0 }
 0x111   :  { %v497_v15 = vpack.c.bf16 %v350_v12, %v349_v11  ;;  %v261_v16 = vpop.permute.xlu1 %260 }
 0x112   :  { %v304_v18 = vmul.f32 %v710_v46, %v261_v16 }
 0x113   :  { %498 = vmatpush1.bf16.msra.mxu0 %v497_v15 }
 0x114   :  { %499 = vmatprep.subr.bf16.mxu0 %v625_v13 }
 0x116   :  { %v161_v19 = vpop.permute.xlu1 %160 }
 0x117   :  { %v328_v20 = vadd.f32 %v304_v18, %v161_v19 }
 0x119   :  { %v352_v22 = vmax.f32 %v328_v20, 0.0 }
 0x11b   :  { %v500_v23 = vpack.c.bf16 %v352_v22, %v351_v21  ;;  %v265_v24 = vpop.permute.xlu1 %264 }
 0x11c   :  { %v305_v27 = vmul.f32 %v710_v46, %v265_v24 }
 0x11d   :  { %501 = vmatpush1.bf16.msra.mxu0 %v500_v23 }
 0x11e   :  { %502 = vmatprep.subr.bf16.mxu0 %v625_v13 }
 0x120   :  { %v166_v26 = vpop.permute.xlu1 %165 }
 0x121   :  { %v329_v29 = vadd.f32 %v305_v27, %v166_v26 }
 0x123   :  { %v353_v33 = vmax.f32 %v329_v29, 0.0 }
 0x124   :  { %v171_v42 = vpop.permute.xlu1 %170 }
 0x125   :  { %v330_v31 = vadd.f32 %v306_v28, %v171_v42 }
 0x127   :  { %v354_v34 = vmax.f32 %v330_v31, 0.0 }
 0x129   :  { %v503_v37 = vpack.c.bf16 %v354_v34, %v353_v33  ;;  %v277_v38 = vpop.permute.xlu1 %276 }
 0x12a   :  { %v308_v43 = vmul.f32 %v710_v46, %v277_v38 }
 0x12b   :  { %504 = vmatpush1.bf16.msra.mxu0 %v503_v37 }
 0x12c   :  { %505 = vmatprep.subr.bf16.mxu0 %v625_v13 }
 0x12e   :  { %v181_v44 = vpop.permute.xlu1 %180 }
 0x12f   :  { %v332_v45 = vadd.f32 %v308_v43, %v181_v44 }
 0x131   :  { %v356_v48 = vmax.f32 %v332_v45, 0.0 }
 0x133   :  { %v506_v49 = vpack.c.bf16 %v356_v48, %v355_v47  ;;  %v363_v50 = vpop.permute.xlu1 %362 }
 0x135   :  { %508 = vmatpush1.bf16.msk.msra.mxu0 %vm507_vm3, %v506_v49 }
 0x138   :  { %447 = vmatmul.mubr.f32.vlgmr.msra.gmra.mrb[0].mxu0 %v706_v41 }
 0x20b   :  { %v448_v51 = vpop.f32.mrb[0].mxu0 }
 0x20c   :  { %v449_v52 = vadd.f32 %v448_v51, %v363_v50  ;;  %v450_v13 = vpop.f32.mrb[1].mxu0 }
 0x20e   :  { %452 = vst [vmem:[#allocation7] sm:$0x1] %v449_v52 }
 0x20f   :  { %602 = shalt.err (!%p599_p6)
}
 0x210   :  { %s603_s12 = scalar_lea.hbm %s765_s2, 16 }
 0x211   :  { %p604_p7 = scmp.ne.s32.totalorder %s765_s2, %s603_s12  ;;  %p607_p8 = scmp.lt.u32.totalorder %s603_s12, %s765_s2 }
 0x213   :  { %p609_p9 = pnand %p607_p8, %p604_p7 }
 0x215   :  { %612 = shalt.err (!%p609_p9)
}
 0x216   :  { %462 = dma.vmem_to_hbm [thread:$0]  %s460_s7, 16, %s765_s2, [#allocation4]  }
 0x217   :  { %617 = dma.done.wait [#allocation4], 16  }
 0x218   :  { %618 = vsyncadd [#allocation4], 4294967280 }
 0x219   :  { %466 = vsyncpa [#allocation3], 1 }
 0x21a   :  { %467 = vsyncpa [#allocation6], 1 }
 0x21b   :  { %468 = vsyncpa [#allocation4], 1 }

</bundles_post_ra>
